<compile_context>
chip_gen: v7x
topology: tpu7x:2x2x1
jax: 0.10.0
libtpu: 0.0.40
codegen_flags: <defaults>
</compile_context>

<pallas_src>
import functools

import jax
import jax.numpy as jnp
from jax.experimental import pallas as pl
from jax.experimental.pallas import tpu as pltpu

_LANE = 128
_SUBLANE = 8
_MIN_STEPS = 8            # >= 2 grid steps per TensorCore on v7x (2 TCs)
_SINGLE_BLOCK_ROWS = 512  # below this many 128-lane rows, one block is fine


def _round_up(a, b):
    return ((a + b - 1) // b) * b


@functools.lru_cache(maxsize=None)
def _tpu_block_config():
    """Per-generation (block_bytes_per_buffer, vmem_limit_bytes)."""
    kind = ""
    try:
        kind = jax.devices()[0].device_kind.lower()
    except Exception:
        pass
    vmem_cap = None
    try:
        vmem_cap = int(getattr(pltpu.get_tpu_info(), "vmem_capacity_bytes"))
    except Exception:
        vmem_cap = None

    if any(tag in kind for tag in ("v6", "v7", "7x")):
        # v6e / v7x: HBM is fast enough that the ~0.35us per-grid-step cost
        # matters -> 8 MiB blocks.  2 in + 2 out double-buffers = 32 MiB,
        # 48 MiB scoped limit leaves headroom yet stays inside v7x's
        # 64 MiB/TC physical VMEM.
        block_bytes, vmem_limit = 8 << 20, 48 << 20
    else:
        # v5e (and unknown chips): 4 MiB blocks already amortize the step
        # overhead at ~820 GB/s; 32 MiB limit (> v5e's 16 MiB scoped default).
        block_bytes, vmem_limit = 4 << 20, 32 << 20

    if vmem_cap:
        # Safety clamp for chips with small physical VMEM.
        vmem_limit = min(vmem_limit, (vmem_cap * 3) // 4)
        block_bytes = min(block_bytes, max(1 << 20, vmem_limit // 6))
    return block_bytes, vmem_limit


def _activate_kernel(x_ref, o_ref, *, method):
    x = x_ref[...]
    if method == "relu":
        o_ref[...] = jnp.maximum(x, jnp.zeros_like(x))
    elif method == "sigmoid":
        # exp on the EUP; f32 math keeps parity with the f32 reference and is
        # mandatory on v5e anyway (no bf16 VPU/EUP).  Kernel is DMA-bound.
        xf = x.astype(jnp.float32)
        o_ref[...] = (1.0 / (1.0 + jnp.exp(-xf))).astype(o_ref.dtype)
    elif method == "leaky_relu":
        o_ref[...] = jnp.where(x >= 0, x, x * jnp.asarray(0.02, dtype=x.dtype))
    else:
        raise NotImplementedError("--->%s" % method)


def _launch(arr, block_shape, index_map, grid, method, vmem_limit, donate):
    alias = {0: 0} if donate else {}
    return pl.pallas_call(
        functools.partial(_activate_kernel, method=method),
        out_shape=jax.ShapeDtypeStruct(arr.shape, arr.dtype),
        grid_spec=pltpu.PrefetchScalarGridSpec(
            num_scalar_prefetch=0,
            grid=grid,
            in_specs=[pl.BlockSpec(block_shape, index_map)],
            out_specs=pl.BlockSpec(block_shape, index_map),
        ),
        compiler_params=pltpu.CompilerParams(
            # "parallel" lets multi-TC chips shard the 1-D grid; measured
            # no-op on single-TC v5e/v6e.
            # TODO(synk): on v7x verify both TensorCores get work; if not,
            # switch this axis to pltpu.CORE_PARALLEL.
            dimension_semantics=("parallel",),
            vmem_limit_bytes=vmem_limit,
        ),
        input_output_aliases=alias,
    )(arr)


def activate(x, method="relu", donate_input=False):
    """Elementwise activation matching nn.ReLU / nn.Sigmoid / nn.LeakyReLU(0.02)."""
    if method not in ("relu", "sigmoid", "leaky_relu"):
        raise NotImplementedError("--->%s" % method)

    orig_shape = x.shape
    dtype = x.dtype
    n = x.size
    if n == 0:
        return x

    itemsize = jnp.dtype(dtype).itemsize
    packing = max(1, 4 // itemsize)      # sublane packing (f32=1, bf16=2, i8=4)
    sub_mult = _SUBLANE * packing        # row-multiple required for partial blocks
    block_bytes, vmem_limit = _tpu_block_config()

    flat = x.reshape(-1)                 # contiguous buffer: free reshape

    if n % _LANE == 0:
        # ---- Common case: 128-aligned count -> lane-dense 2-D slab (rows, 128).
        rows = n // _LANE
        slab = flat.reshape(rows, _LANE)
        target_rows = max(
            sub_mult,
            (block_bytes // (_LANE * itemsize)) // sub_mult * sub_mult,
        )
        if rows <= _SINGLE_BLOCK_ROWS:
            block_rows = rows            # single full-array block (exempt from (8,128) rule)
        else:
            # >= _MIN_STEPS steps for pipelining / multi-TC, capped by the
            # VMEM target; ragged last row-block handled by the pipeline.
            block_rows = min(target_rows,
                             _round_up(pl.cdiv(rows, _MIN_STEPS), sub_mult))
            block_rows = max(block_rows, sub_mult)
        grid = (pl.cdiv(rows, block_rows),)
        out = _launch(slab, (block_rows, _LANE), lambda i: (i, 0),
                      grid, method, vmem_limit, donate_input)
        return out.reshape(orig_shape)

    # ---- Misaligned count: run directly on the flat rank-1 buffer.  No pad,
    # no trailing slice; the pipeline masks the ragged final block's DMA.
    unit = sub_mult * _LANE              # 1024 f32 / 2048 bf16 elements
    target_elems = max(unit, (block_bytes // itemsize) // unit * unit)
    if n <= _SINGLE_BLOCK_ROWS * _LANE:
        block_elems = n                  # single full-array block
    else:
        block_elems = min(target_elems,
                          _round_up(pl.cdiv(n, _MIN_STEPS), unit))
        block_elems = max(block_elems, unit)
    grid = (pl.cdiv(n, block_elems),)
    out = _launch(flat, (block_elems,), lambda i: (i,),
                  grid, method, vmem_limit, donate_input)
    return out.reshape(orig_shape)


def _ref(x, method):
    # Pure-JAX reference of the PyTorch semantics.
    if method == "relu":
        return jnp.maximum(x, 0)
    if method == "sigmoid":
        return jax.nn.sigmoid(x)
    if method == "leaky_relu":
        return jnp.where(x >= 0, x, 0.02 * x)
    raise NotImplementedError(method)


if __name__ == "__main__":
    key = jax.random.PRNGKey(0)
    k0, k1, k2, k3 = jax.random.split(key, 4)

    test_inputs = [
        # 128-aligned NCHW (common conv-net case) -> 2-D slab, single block.
        jax.random.normal(k0, (2, 4, 16, 16), dtype=jnp.float32),
        # Misaligned element count -> rank-1 path, single full-array block.
        jax.random.normal(k1, (3, 5, 7, 11), dtype=jnp.float32),
        # Aligned, rows > 512 -> gridded 2-D path with ragged last row-block.
        jax.random.normal(k2, (2, 3, 100, 128), dtype=jnp.float32),
        # Misaligned and large -> gridded rank-1 path with ragged final block.
        jax.random.normal(k3, (3, 7, 61, 61), dtype=jnp.float32),
    ]

    ok = True
    for x in test_inputs:
        for method in ("relu", "sigmoid", "leaky_relu"):
            ref = _ref(x, method)
            y = jax.block_until_ready(activate(x, method=method))
            if not jnp.allclose(y, ref, atol=1e-6, rtol=1e-6):
                ok = False
                print(f"MISMATCH for {method} shape {x.shape}: max err "
                      f"{float(jnp.max(jnp.abs(y - ref)))}")

    # In-place-style variant (input_output_aliases={0: 0}); reference computed
    # beforehand so donation cannot affect the check.
    x = test_inputs[0]
    ref = _ref(x, "relu")
    y = jax.block_until_ready(activate(x, method="relu", donate_input=True))
    if not jnp.allclose(y, ref, atol=1e-6, rtol=1e-6):
        ok = False
        print("MISMATCH for donated relu")

    if ok:
        print("KERNEL_OK")
</pallas_src>

<mosaic_0001>
module attributes {stable_mosaic.version = 11 : i64} {
  func.func @_activate_kernel(%arg0: i32, %arg1: memref<16x128xf32, #tpu.memory_space<vmem>>, %arg2: memref<16x128xf32, #tpu.memory_space<vmem>>) attributes {dimension_semantics = [#tpu.dimension_semantics<parallel>], iteration_bounds = array<i64: 1>, scalar_prefetch = 0 : i64, scratch_operands = 0 : i64, tpu.core_type = #tpu.core_type<tc>, window_params = [{transform_indices = @transform_0, window_bounds = array<i64: 16, 128>}, {transform_indices = @transform_1, window_bounds = array<i64: 16, 128>}]} {
    %c0 = arith.constant 0 : index
    %c0_0 = arith.constant 0 : index
    %0 = vector.load %arg1[%c0, %c0_0] : memref<16x128xf32, #tpu.memory_space<vmem>>, vector<16x128xf32>
    %cst = arith.constant 0.000000e+00 : f32
    %1 = vector.broadcast %cst : f32 to vector<16x128xf32>
    %2 = arith.maximumf %0, %1 : vector<16x128xf32>
    %c0_1 = arith.constant 0 : index
    %c0_2 = arith.constant 0 : index
    %3 = vector.load %arg2[%c0_1, %c0_2] : memref<16x128xf32, #tpu.memory_space<vmem>>, vector<16x128xf32>
    tpu.vector_store %arg2[%c0_1, %c0_2], %2 {strides = array<i32>} : memref<16x128xf32, #tpu.memory_space<vmem>>, vector<16x128xf32>,
    return
  }
  func.func @transform_0(%arg0: i32) -> (i32, i32) {
    %c0_i32 = arith.constant 0 : i32
    %c0_i32_0 = arith.constant 0 : i32
    return %arg0, %c0_i32 : i32, i32
  }
  func.func @transform_1(%arg0: i32) -> (i32, i32) {
    %c0_i32 = arith.constant 0 : i32
    %c0_i32_0 = arith.constant 0 : i32
    return %arg0, %c0_i32 : i32, i32
  }
}

</mosaic_0001>

<bundles_post_ra>
// kernel: tpu_custom_call.1
= control target key start
LH: loop header
LB: loop body
LE: loop exit
PB: predicated region body
PF: predicated region fallthrough
CT: control target
= control target key end

     0   :  { %6 = vsyncpa [#allocation3], 0  ;;  %s136_s0 = inlined_call_operand.hbm [shape: f32[16,128], index: 0, kind: input, shape index: {}]   ;;  %s137_s1 = inlined_call_operand.hbm [shape: f32[16,128], index: 1, kind: output, shape index: {}]  }
   0x1   :  { %7 = vsyncpa [#allocation4], 0  ;;  %s98_s6 = smov [#allocation2]   ;;  %s50_s10 = scalar_lea.hbm %s136_s0, 256 }
   0x2   :  { %s13_s7 = sshll.u32 %s98_s6, 4  ;;  %p51_p0 = scmp.ne.s32.totalorder %s136_s0, %s50_s10  ;;  %s14_s7 = int_to_ptr.vmem [resolvable:$true] %s13_s7 }
   0x3   :  { %p54_p1 = scmp.lt.u32.totalorder %s50_s10, %s136_s0 }
   0x5   :  { %p56_p2 = pnand %p54_p1, %p51_p0 }
   0x7   :  { %59 = shalt.err (!%p56_p2)
}
   0x8   :  { %s60_s15 = scalar_lea.vmem %s14_s7, 256  ;;  %p65_p4 = scmp.lt.s32.totalorder %s14_s7, %s14_s7 }
   0x9   :  { %p61_p3 = scmp.ne.s32.totalorder %s14_s7, %s60_s15  ;;  %p66_p5 = scmp.lt.s32.totalorder %s60_s15, %s60_s15 }
   0xb   :  { %p67_p6 = por %p66_p5, %p65_p4 }
   0xd   :  { %p68_p7 = pnand %p67_p6, %p61_p3 }
   0xf   :  { %71 = shalt.err (!%p68_p7)
}
  0x10   :  { %s99_s16 = smov 128   ;;  %s100_s17 = smov 8  }
  0x11   :  { %19 = dma.hbm_to_vmem [thread:$0]  %s136_s0, 256, %s14_s7, [#allocation3], %s99_s16, %s99_s16, %s100_s17  }
  0x12   :  { %94 = dma.done.wait [#allocation3], 256  }
  0x13   :  { %95 = vsyncadd [#allocation3], 4294967040  ;;  %s101_s20 = smov [#allocation5]   ;;  %v23_v0 = vld [vmem:[#allocation2] sm:$0xff]  ;;  %v24_v1 = vld [vmem:[#allocation2 + $0x8] sm:$0xff] }
  0x14   :  { %s34_s21 = sshll.u32 %s101_s20, 4  ;;  %v25_v2 = vmax.f32 %v23_v0, 0.0  ;;  %v26_v3 = vmax.f32 %v24_v1, 0.0  ;;  %s35_s21 = int_to_ptr.vmem [resolvable:$true] %s34_s21 }
  0x15   :  { %s72_s22 = scalar_lea.vmem %s35_s21, 256  ;;  %p77_p9 = scmp.lt.s32.totalorder %s35_s21, %s35_s21 }
  0x16   :  { %27 = vst [vmem:[#allocation5] sm:$0xff] %v25_v2  ;;  %28 = vst [vmem:[#allocation5 + $0x8] sm:$0xff] %v26_v3  ;;  %p73_p8 = scmp.ne.s32.totalorder %s35_s21, %s72_s22  ;;  %p78_p10 = scmp.lt.s32.totalorder %s72_s22, %s72_s22 }
  0x18   :  { %p79_p11 = por %p78_p10, %p77_p9 }
  0x1a   :  { %p80_p12 = pnand %p79_p11, %p73_p8 }
  0x1c   :  { %83 = shalt.err (!%p80_p12)
}
  0x1d   :  { %s84_s24 = scalar_lea.hbm %s137_s1, 256 }
  0x1e   :  { %p85_p13 = scmp.ne.s32.totalorder %s137_s1, %s84_s24  ;;  %p88_p0 = scmp.lt.u32.totalorder %s84_s24, %s137_s1 }
  0x20   :  { %p90_p1 = pnand %p88_p0, %p85_p13 }
  0x22   :  { %93 = shalt.err (!%p90_p1)
}
  0x23   :  { %40 = dma.vmem_to_hbm [thread:$0]  %s35_s21, 256, %s137_s1, [#allocation4], %s99_s16, %s99_s16, %s100_s17  }
  0x24   :  { %96 = dma.done.wait [#allocation4], 256  }
  0x25   :  { %97 = vsyncadd [#allocation4], 4294967040 }
  0x26   :  { %44 = vsyncpa [#allocation3], 1 }
  0x27   :  { %45 = vsyncpa [#allocation4], 1 }

</bundles_post_ra>
